<compile_context>
chip_gen: v7x
topology: tpu7x:2x2x1
jax: 0.10.0
libtpu: 0.0.40
codegen_flags: <defaults>
</compile_context>

<pallas_src>
import math

import jax
import jax.numpy as jnp
from jax.experimental import pallas as pl
from jax.experimental.pallas import tpu as pltpu

_SUBLANE = 8                      # f32 sublane count per vreg
_MIN_LANE = 128                   # vreg lane width
_DEFAULT_BLOCK_BYTES = 4 << 20    # 4 MiB blocks: ~85% of HBM roofline for copies
_MAX_BLOCK_BYTES = 6 << 20        # 4 resident buffers <= ~24 MiB (v7x-safe)
_VMEM_LIMIT_BYTES = 32 << 20      # explicit scoped-VMEM budget (all generations)


def _copy_kernel(x_ref, o_ref):
    # Identity copy of the current tile through VMEM.
    o_ref[...] = x_ref[...]


def _pick_lane(total):
    """Widest lane width that divides `total` (wider rows -> less bookkeeping)."""
    for lane in (1024, 512, 256, _MIN_LANE):
        if total % lane == 0:
            return lane
    return None


def _pipelined_copy(flat, block_bytes):
    """Identity-copy a 1-D array via a tiled, double-buffered Pallas kernel."""
    total = int(flat.shape[0])
    itemsize = jnp.dtype(flat.dtype).itemsize

    block_bytes = int(block_bytes)
    block_bytes = max(block_bytes, _SUBLANE * _MIN_LANE * itemsize)
    block_bytes = min(block_bytes, _MAX_BLOCK_BYTES)

    lane = _pick_lane(total)
    padded = total
    if lane is None:
        # Ragged element count: pad to the next lane multiple, copy densely,
        # slice afterwards (avoids masked vst / strided DMA fallbacks).
        lane = _MIN_LANE
        padded = ((total + lane - 1) // lane) * lane
        flat = jnp.pad(flat, (0, padded - total))

    rows = padded // lane
    row_bytes = lane * itemsize
    tile_rows = (block_bytes // row_bytes) // _SUBLANE * _SUBLANE
    tile_rows = max(_SUBLANE, tile_rows)
    if tile_rows >= rows:
        tile_rows = rows  # single full-extent block (always legal)

    x2d = flat.reshape(rows, lane)
    out2d = pl.pallas_call(
        _copy_kernel,
        out_shape=jax.ShapeDtypeStruct((rows, lane), flat.dtype),
        grid=(pl.cdiv(rows, tile_rows),),
        in_specs=[pl.BlockSpec((tile_rows, lane), lambda i: (i, 0))],
        out_specs=pl.BlockSpec((tile_rows, lane), lambda i: (i, 0)),
        compiler_params=pltpu.CompilerParams(
            dimension_semantics=("parallel",),        # megacore-shard on v7x
            vmem_limit_bytes=_VMEM_LIMIT_BYTES,
        ),
    )(x2d)

    out_flat = out2d.reshape(padded)
    if padded != total:
        out_flat = out_flat[:total]
    return out_flat


def view_pallas(x, *shape, copy=False, block_bytes=_DEFAULT_BLOCK_BYTES):
    """Pallas equivalent of View(*shape): x.view(x.shape[0], *shape).

    Default (`copy=False`): pure-metadata reshape, zero bytes moved.
    `copy=True`: opt-in tiled, software-pipelined Pallas identity copy.
    """
    batch = int(x.shape[0])
    flat = int(math.prod(x.shape[1:])) if x.ndim > 1 else 1
    target_flat = int(math.prod(shape)) if len(shape) > 0 else 1
    if flat != target_flat:
        raise ValueError(
            f"cannot view input with {flat} elements per batch as shape {shape}"
        )
    out_shape = (batch,) + tuple(int(s) for s in shape)

    if not copy:
        # The best possible "kernel" for a view is no kernel at all.
        return x.reshape(out_shape)

    total = batch * flat
    out_flat = _pipelined_copy(x.reshape(total), block_bytes)
    return out_flat.reshape(out_shape)


if __name__ == "__main__":
    key = jax.random.PRNGKey(0)

    # NCHW input consistent with the module usage; View(C*H*W) flattens it.
    B, C, H, W = 2, 4, 16, 16
    x = jax.random.normal(key, (B, C, H, W), dtype=jnp.float32)
    ref = x.reshape(B, C * H * W)

    # Default zero-copy path (the recommended production path).
    y0 = jax.block_until_ready(view_pallas(x, C * H * W))
    assert y0.shape == (B, C * H * W) and y0.dtype == x.dtype
    assert bool(jnp.array_equal(y0, ref))

    # Opt-in Pallas copy path (single lane-dense block for this small input).
    y1 = jax.block_until_ready(view_pallas(x, C * H * W, copy=True))
    assert y1.shape == (B, C * H * W) and y1.dtype == x.dtype
    assert bool(jnp.array_equal(y1, ref))

    # Non-flat target shape: View(C, H * W).
    y2 = jax.block_until_ready(view_pallas(x, C, H * W, copy=True))
    assert y2.shape == (B, C, H * W)
    assert bool(jnp.array_equal(y2, x.reshape(B, C, H * W)))

    # Exercise the multi-block pipelined grid (small block_bytes -> grid > 1).
    xb = jax.random.normal(key, (2, 8, 32, 32), dtype=jnp.float32)
    y3 = jax.block_until_ready(view_pallas(xb, 8 * 32 * 32, copy=True,
                                           block_bytes=32 * 1024))
    assert bool(jnp.array_equal(y3, xb.reshape(2, 8 * 32 * 32)))

    # Exercise a partial (masked) trailing row-block: rows=10, tile_rows=8.
    xp = jax.random.normal(key, (2, 5, 32, 32), dtype=jnp.float32)
    y4 = jax.block_until_ready(view_pallas(xp, 5, 32 * 32, copy=True,
                                           block_bytes=32 * 1024))
    assert bool(jnp.array_equal(y4, xp.reshape(2, 5, 32 * 32)))

    # Ragged element count (not a multiple of 128): pad -> dense copy -> slice.
    x_odd = jax.random.normal(key, (2, 3, 5, 7), dtype=jnp.float32)
    y5 = jax.block_until_ready(view_pallas(x_odd, 3, 35, copy=True))
    assert y5.shape == (2, 3, 35)
    assert bool(jnp.array_equal(y5, x_odd.reshape(2, 3, 35)))

    print("KERNEL_OK")
</pallas_src>

<mosaic_0001>
module attributes {stable_mosaic.version = 11 : i64} {
  func.func @_copy_kernel(%arg0: i32, %arg1: memref<2x1024xf32, #tpu.memory_space<vmem>>, %arg2: memref<2x1024xf32, #tpu.memory_space<vmem>>) attributes {dimension_semantics = [#tpu.dimension_semantics<parallel>], iteration_bounds = array<i64: 1>, scalar_prefetch = 0 : i64, scratch_operands = 0 : i64, tpu.core_type = #tpu.core_type<tc>, window_params = [{transform_indices = @transform_0, window_bounds = array<i64: 2, 1024>}, {transform_indices = @transform_1, window_bounds = array<i64: 2, 1024>}]} {
    %c0 = arith.constant 0 : index
    %c0_0 = arith.constant 0 : index
    %0 = vector.load %arg1[%c0, %c0_0] : memref<2x1024xf32, #tpu.memory_space<vmem>>, vector<2x1024xf32>
    %c0_1 = arith.constant 0 : index
    %c0_2 = arith.constant 0 : index
    %1 = vector.load %arg2[%c0_1, %c0_2] : memref<2x1024xf32, #tpu.memory_space<vmem>>, vector<2x1024xf32>
    tpu.vector_store %arg2[%c0_1, %c0_2], %0 {strides = array<i32>} : memref<2x1024xf32, #tpu.memory_space<vmem>>, vector<2x1024xf32>,
    return
  }
  func.func @transform_0(%arg0: i32) -> (i32, i32) {
    %c0_i32 = arith.constant 0 : i32
    %c0_i32_0 = arith.constant 0 : i32
    return %arg0, %c0_i32 : i32, i32
  }
  func.func @transform_1(%arg0: i32) -> (i32, i32) {
    %c0_i32 = arith.constant 0 : i32
    %c0_i32_0 = arith.constant 0 : i32
    return %arg0, %c0_i32 : i32, i32
  }
}

</mosaic_0001>

<bundles_post_ra>
// kernel: tpu_custom_call.1
= control target key start
LH: loop header
LB: loop body
LE: loop exit
PB: predicated region body
PF: predicated region fallthrough
CT: control target
= control target key end

     0   :  { %6 = vsyncpa [#allocation3], 0  ;;  %s126_s0 = inlined_call_operand.hbm [shape: f32[2,1024], index: 0, kind: input, shape index: {}]   ;;  %s127_s1 = inlined_call_operand.hbm [shape: f32[2,1024], index: 1, kind: output, shape index: {}]  }
   0x1   :  { %7 = vsyncpa [#allocation4], 0  ;;  %s90_s6 = smov [#allocation2]   ;;  %s42_s10 = scalar_lea.hbm %s126_s0, 256 }
   0x2   :  { %s14_s7 = sshll.u32 %s90_s6, 4  ;;  %p43_p0 = scmp.ne.s32.totalorder %s126_s0, %s42_s10  ;;  %s15_s7 = int_to_ptr.vmem [resolvable:$true] %s14_s7 }
   0x3   :  { %p46_p1 = scmp.lt.u32.totalorder %s42_s10, %s126_s0 }
   0x5   :  { %p48_p2 = pnand %p46_p1, %p43_p0 }
   0x7   :  { %51 = shalt.err (!%p48_p2)
}
   0x8   :  { %s52_s15 = scalar_lea.vmem %s15_s7, 256  ;;  %p57_p4 = scmp.lt.s32.totalorder %s15_s7, %s15_s7 }
   0x9   :  { %p53_p3 = scmp.ne.s32.totalorder %s15_s7, %s52_s15  ;;  %p58_p5 = scmp.lt.s32.totalorder %s52_s15, %s52_s15 }
   0xb   :  { %p59_p6 = por %p58_p5, %p57_p4 }
   0xd   :  { %p60_p7 = pnand %p59_p6, %p53_p3 }
   0xf   :  { %63 = shalt.err (!%p60_p7)
}
  0x10   :  { %17 = dma.hbm_to_vmem [thread:$0]  %s126_s0, 256, %s15_s7, [#allocation3]  }
  0x11   :  { %86 = dma.done.wait [#allocation3], 256  }
  0x12   :  { %87 = vsyncadd [#allocation3], 4294967040  ;;  %s91_s18 = smov [#allocation5]   ;;  %v21_v0 = vld [vmem:[#allocation2] sm:$0xff]  ;;  %v22_v1 = vld [vmem:[#allocation2 + $0x8] sm:$0xff] }
  0x13   :  { %s31_s19 = sshll.u32 %s91_s18, 4  ;;  %23 = vst [vmem:[#allocation5] sm:$0xff] %v21_v0  ;;  %24 = vst [vmem:[#allocation5 + $0x8] sm:$0xff] %v22_v1  ;;  %s32_s19 = int_to_ptr.vmem [resolvable:$true] %s31_s19 }
  0x14   :  { %s64_s20 = scalar_lea.vmem %s32_s19, 256  ;;  %p69_p9 = scmp.lt.s32.totalorder %s32_s19, %s32_s19 }
  0x15   :  { %p65_p8 = scmp.ne.s32.totalorder %s32_s19, %s64_s20  ;;  %p70_p10 = scmp.lt.s32.totalorder %s64_s20, %s64_s20 }
  0x17   :  { %p71_p11 = por %p70_p10, %p69_p9 }
  0x19   :  { %p72_p12 = pnand %p71_p11, %p65_p8 }
  0x1b   :  { %75 = shalt.err (!%p72_p12)
}
  0x1c   :  { %s76_s0 = scalar_lea.hbm %s127_s1, 256 }
  0x1d   :  { %p77_p13 = scmp.ne.s32.totalorder %s127_s1, %s76_s0  ;;  %p80_p0 = scmp.lt.u32.totalorder %s76_s0, %s127_s1 }
  0x1f   :  { %p82_p1 = pnand %p80_p0, %p77_p13 }
  0x21   :  { %85 = shalt.err (!%p82_p1)
}
  0x22   :  { %34 = dma.vmem_to_hbm [thread:$0]  %s32_s19, 256, %s127_s1, [#allocation4]  }
  0x23   :  { %88 = dma.done.wait [#allocation4], 256  }
  0x24   :  { %89 = vsyncadd [#allocation4], 4294967040 }
  0x25   :  { %38 = vsyncpa [#allocation3], 1 }
  0x26   :  { %39 = vsyncpa [#allocation4], 1 }

</bundles_post_ra>
